<compile_context>
chip_gen: v7x
topology: tpu7x:2x2x1
jax: 0.10.0
libtpu: 0.0.40
codegen_flags: <defaults>
</compile_context>

<pallas_src>
import numpy as np
import jax
import jax.numpy as jnp
from jax import lax
from jax.experimental import pallas as pl
from jax.experimental.pallas import tpu as pltpu

IOU_THRESH = 0.5
CONF_THRESH = 0.25
SUB = 8          # sublanes per f32 vreg (packing factor)
AUX_LANES = 128  # lane-padded width of the transposed winner-lookup table


def _yolo_postprocess_kernel(feat_ref, aux_ref, out_ref, valid_ref,
                             masked_ref, area_ref, colidx_ref):
    # feat_ref : (5, 8, NC)  sublane-packed feature rows [cx, cy, w, h, conf]
    # aux_ref  : (N8, 128)   transposed features, lanes 0..3 = cx, cy, w, h
    # out_ref  : (5, 8, NC)  packed output rows [x1, y1, x2, y2, score]
    # valid_ref: (8, NC)     1.0 where the box is kept
    ncol = feat_ref.shape[2]
    n8 = SUB * ncol

    cx = feat_ref[0]
    cy = feat_ref[1]
    w = feat_ref[2]
    h = feat_ref[3]
    conf = feat_ref[4]

    # yolo_out_splitter: person_conf / person_conf.max()  (true divide, one-time)
    conf = conf / jnp.max(conf)

    # cxcywh -> xyxy on packed (8, NC) tiles
    x1 = cx - 0.5 * w
    y1 = cy - 0.5 * h
    x2 = cx + 0.5 * w
    y2 = cy + 0.5 * h
    area = (x2 - x1) * (y2 - y1)

    # per-row stores (no sublane-axis concatenates)
    out_ref[0] = x1
    out_ref[1] = y1
    out_ref[2] = x2
    out_ref[3] = y2
    out_ref[4] = conf
    area_ref[...] = area

    # original anchor index of each packed element: sub * NC + lane
    colidx_ref[...] = (lax.broadcasted_iota(jnp.int32, (SUB, ncol), 0) * ncol +
                       lax.broadcasted_iota(jnp.int32, (SUB, ncol), 1))

    # fused score + alive mask: score when alive, -1 dead/suppressed, -2 picked.
    # Confidence pre-filter: a sub-threshold box can only suppress boxes with
    # even lower scores, all of which the final >= 0.25 filter drops anyway.
    conf_thr = jnp.float32(CONF_THRESH)
    alive0 = conf >= conf_thr
    masked_ref[...] = jnp.where(alive0, conf, jnp.float32(-1.0))

    # each productive iteration retires at least the picked candidate
    num_iters = jnp.sum(alive0.astype(jnp.float32)).astype(jnp.int32)

    @pl.loop(0, num_iters)
    def _(step):
        masked = masked_ref[...]
        best = jnp.max(masked)

        # once everything >= 0.25 is retired, trailing iterations are skipped
        @pl.when(best >= conf_thr)
        def _():
            colidx = colidx_ref[...]
            # lowest original index attaining the max (torch tie-break)
            cand = jnp.where(masked >= best, colidx, jnp.int32(n8))
            best_idx = jnp.min(cand)

            # O(1) winner lookup: one dynamic row load from the transposed table,
            # then four single-vreg reduces (exactly one nonzero term -> exact).
            row = aux_ref[pl.ds(best_idx, 1), :]                      # (1, 128)
            lane = lax.broadcasted_iota(jnp.int32, (1, AUX_LANES), 1)
            wcx = jnp.sum(jnp.where(lane == 0, row, 0.0))
            wcy = jnp.sum(jnp.where(lane == 1, row, 0.0))
            ww = jnp.sum(jnp.where(lane == 2, row, 0.0))
            wh = jnp.sum(jnp.where(lane == 3, row, 0.0))
            wx1 = wcx - 0.5 * ww
            wy1 = wcy - 0.5 * wh
            wx2 = wcx + 0.5 * ww
            wy2 = wcy + 0.5 * wh
            warea = (wx2 - wx1) * (wy2 - wy1)

            # geometry re-loaded from refs (nothing large closed over the loop)
            bx1 = out_ref[0]
            by1 = out_ref[1]
            bx2 = out_ref[2]
            by2 = out_ref[3]
            barea = area_ref[...]

            # IoU row against all boxes: scalar-vs-(8, NC) VPU work, divide-free
            iw = jnp.maximum(jnp.minimum(wx2, bx2) - jnp.maximum(wx1, bx1), 0.0)
            ih = jnp.maximum(jnp.minimum(wy2, by2) - jnp.maximum(wy1, by1), 0.0)
            inter = iw * ih
            union = warea + barea - inter
            suppress = inter > jnp.float32(IOU_THRESH) * union

            picked = colidx == best_idx
            masked_ref[...] = jnp.where(
                picked, jnp.float32(-2.0),
                jnp.where(suppress, jnp.float32(-1.0), masked))

    # kept boxes are exactly the picked (-2) entries
    valid_ref[...] = (masked_ref[...] < jnp.float32(-1.5)).astype(jnp.float32)


def yolo_postprocess_padded(yolo_raw_out):
    """Pallas path: packed (5, N) boxes_and_scores table + (N,) validity mask."""
    feat = yolo_raw_out[0].astype(jnp.float32)          # (5, N): native layout
    n = feat.shape[1]
    n8 = ((n + SUB - 1) // SUB) * SUB
    if n8 != n:
        # pad with conf=0 / zero geometry: never picked, never valid, never suppresses
        feat = jnp.pad(feat, ((0, 0), (0, n8 - n)))
    ncol = n8 // SUB

    feat_p = feat.reshape(5, SUB, ncol)                  # free row-major repack
    aux = jnp.pad(feat.T, ((0, 0), (0, AUX_LANES - 5)))  # (n8, 128) winner-lookup table

    out_p, valid_p = pl.pallas_call(
        _yolo_postprocess_kernel,
        out_shape=(
            jax.ShapeDtypeStruct((5, SUB, ncol), jnp.float32),
            jax.ShapeDtypeStruct((SUB, ncol), jnp.float32),
        ),
        grid=(1,),
        in_specs=[
            pl.BlockSpec((5, SUB, ncol), lambda i: (0, 0, 0)),
            pl.BlockSpec((n8, AUX_LANES), lambda i: (0, 0)),
        ],
        out_specs=(
            pl.BlockSpec((5, SUB, ncol), lambda i: (0, 0, 0)),
            pl.BlockSpec((SUB, ncol), lambda i: (0, 0)),
        ),
        scratch_shapes=[
            pltpu.VMEM((SUB, ncol), jnp.float32),   # masked_conf (fused alive+score)
            pltpu.VMEM((SUB, ncol), jnp.float32),   # area
            pltpu.VMEM((SUB, ncol), jnp.int32),     # original anchor index
        ],
        compiler_params=pltpu.CompilerParams(dimension_semantics=("arbitrary",)),
    )(feat_p, aux)

    out = out_p.reshape(5, n8)[:, :n]                    # back to lane-dense (5, N)
    valid = valid_p.reshape(n8)[:n]
    return out, valid


def yolo_postprocess(yolo_raw_out):
    """Full torch-equivalent forward (dynamic number of output rows)."""
    out, valid = yolo_postprocess_padded(yolo_raw_out)
    # TODO(synk): dynamic-length row compaction has no static-shape Pallas
    # equivalent; compact + sort the fixed-size padded table on the host.
    out = np.asarray(jax.block_until_ready(out)).T       # (N, 5)
    valid = np.asarray(jax.block_until_ready(valid))
    kept = out[valid > 0.5]
    # torchvision.ops.nms returns indices in decreasing-score order
    order = np.argsort(-kept[:, 4], kind="stable")
    return kept[order]


# ---------------- pure-numpy reference (mirrors torch semantics) ----------------
def _reference(yolo_raw_out):
    raw = np.asarray(yolo_raw_out)[0].T                  # permute(0,2,1).squeeze(0) -> (N, 5)
    cxcywh = raw[:, :4]
    conf = raw[:, 4] / raw[:, 4].max()
    x1 = cxcywh[:, 0] - 0.5 * cxcywh[:, 2]
    y1 = cxcywh[:, 1] - 0.5 * cxcywh[:, 3]
    x2 = cxcywh[:, 0] + 0.5 * cxcywh[:, 2]
    y2 = cxcywh[:, 1] + 0.5 * cxcywh[:, 3]
    boxes = np.stack([x1, y1, x2, y2], axis=1)
    area = (x2 - x1) * (y2 - y1)
    order = np.argsort(-conf, kind="stable")
    suppressed = np.zeros(len(conf), dtype=bool)
    kept_idx = []
    for i in order:
        if suppressed[i]:
            continue
        kept_idx.append(i)
        xx1 = np.maximum(x1[i], x1); yy1 = np.maximum(y1[i], y1)
        xx2 = np.minimum(x2[i], x2); yy2 = np.minimum(y2[i], y2)
        inter = np.maximum(xx2 - xx1, 0) * np.maximum(yy2 - yy1, 0)
        iou = inter / (area[i] + area - inter)
        suppressed |= iou > IOU_THRESH
    kept_idx = np.array(kept_idx, dtype=np.int64)
    bs = np.concatenate([boxes[kept_idx], conf[kept_idx, None]], axis=1)
    return bs[bs[:, 4] >= CONF_THRESH]


if __name__ == "__main__":
    N = 128   # number of YOLO anchors (small test size)
    key = jax.random.PRNGKey(0)
    k1, k2 = jax.random.split(key, 2)

    # yolo_raw_out: (1, 5, N), channels = [cx, cy, w, h, person_conf], pixel units
    yolo_box = jax.random.uniform(k1, (1, 4, N), minval=50.0, maxval=600.0)
    yolo_conf = jax.random.uniform(k2, (1, 1, N), minval=0.05, maxval=1.0)
    yolo_raw = jnp.concatenate([yolo_box, yolo_conf], axis=1).astype(jnp.float32)

    result = yolo_postprocess(yolo_raw)                  # (num_kept, 5) = xyxy + score
    ref = _reference(yolo_raw)

    assert result.shape == ref.shape, (result.shape, ref.shape)
    np.testing.assert_allclose(result, ref, rtol=1e-5, atol=1e-4)
    print("KERNEL_OK")
</pallas_src>

<mosaic_0001>
module attributes {stable_mosaic.version = 11 : i64} {
  func.func @_yolo_postprocess_kernel(%arg0: i32, %arg1: memref<5x8x16xf32, #tpu.memory_space<vmem>>, %arg2: memref<128x128xf32, #tpu.memory_space<vmem>>, %arg3: memref<5x8x16xf32, #tpu.memory_space<vmem>>, %arg4: memref<8x16xf32, #tpu.memory_space<vmem>>, %arg5: memref<8x16xf32, #tpu.memory_space<vmem>>, %arg6: memref<8x16xf32, #tpu.memory_space<vmem>>, %arg7: memref<8x16xi32, #tpu.memory_space<vmem>>) attributes {dimension_semantics = [#tpu.dimension_semantics<arbitrary>], iteration_bounds = array<i64: 1>, scalar_prefetch = 0 : i64, scratch_operands = 3 : i64, tpu.core_type = #tpu.core_type<tc>, window_params = [{pipeline_mode = #tpu.pipeline_mode<synchronous>, transform_indices = @transform_0, window_bounds = array<i64: 5, 8, 16>}, {pipeline_mode = #tpu.pipeline_mode<synchronous>, transform_indices = @transform_1, window_bounds = array<i64: 128, 128>}, {pipeline_mode = #tpu.pipeline_mode<synchronous>, transform_indices = @transform_2, window_bounds = array<i64: 5, 8, 16>}, {pipeline_mode = #tpu.pipeline_mode<synchronous>, transform_indices = @transform_3, window_bounds = array<i64: 8, 16>}]} {
    %c0 = arith.constant 0 : index
    %c0_0 = arith.constant 0 : index
    %c0_1 = arith.constant 0 : index
    %0 = vector.load %arg1[%c0, %c0_0, %c0_1] : memref<5x8x16xf32, #tpu.memory_space<vmem>>, vector<1x8x16xf32>
    %1 = vector.shape_cast %0 : vector<1x8x16xf32> to vector<8x16xf32>
    %c1 = arith.constant 1 : index
    %c0_2 = arith.constant 0 : index
    %c0_3 = arith.constant 0 : index
    %2 = vector.load %arg1[%c1, %c0_2, %c0_3] : memref<5x8x16xf32, #tpu.memory_space<vmem>>, vector<1x8x16xf32>
    %3 = vector.shape_cast %2 : vector<1x8x16xf32> to vector<8x16xf32>
    %c2 = arith.constant 2 : index
    %c0_4 = arith.constant 0 : index
    %c0_5 = arith.constant 0 : index
    %4 = vector.load %arg1[%c2, %c0_4, %c0_5] : memref<5x8x16xf32, #tpu.memory_space<vmem>>, vector<1x8x16xf32>
    %5 = vector.shape_cast %4 : vector<1x8x16xf32> to vector<8x16xf32>
    %c3 = arith.constant 3 : index
    %c0_6 = arith.constant 0 : index
    %c0_7 = arith.constant 0 : index
    %6 = vector.load %arg1[%c3, %c0_6, %c0_7] : memref<5x8x16xf32, #tpu.memory_space<vmem>>, vector<1x8x16xf32>
    %7 = vector.shape_cast %6 : vector<1x8x16xf32> to vector<8x16xf32>
    %c4 = arith.constant 4 : index
    %c0_8 = arith.constant 0 : index
    %c0_9 = arith.constant 0 : index
    %8 = vector.load %arg1[%c4, %c0_8, %c0_9] : memref<5x8x16xf32, #tpu.memory_space<vmem>>, vector<1x8x16xf32>
    %9 = vector.shape_cast %8 : vector<1x8x16xf32> to vector<8x16xf32>
    %10 = vector.shape_cast %9 : vector<8x16xf32> to vector<1x8x16xf32>
    %cst = arith.constant dense<0xFF800000> : vector<1xf32>
    %11 = vector.multi_reduction <maximumf>, %10, %cst [1, 2] : vector<1x8x16xf32> to vector<1xf32>
    %12 = vector.shape_cast %11 : vector<1xf32> to vector<1x1x1xf32>
    %13 = vector.extract %12[0, 0, 0] : f32 from vector<1x1x1xf32>
    %14 = vector.broadcast %13 : f32 to vector<8x16xf32>
    %15 = arith.divf %9, %14 : vector<8x16xf32>
    %cst_10 = arith.constant 5.000000e-01 : f32
    %16 = vector.broadcast %cst_10 : f32 to vector<8x16xf32>
    %17 = arith.mulf %16, %5 : vector<8x16xf32>
    %18 = arith.subf %1, %17 : vector<8x16xf32>
    %cst_11 = arith.constant 5.000000e-01 : f32
    %19 = vector.broadcast %cst_11 : f32 to vector<8x16xf32>
    %20 = arith.mulf %19, %7 : vector<8x16xf32>
    %21 = arith.subf %3, %20 : vector<8x16xf32>
    %cst_12 = arith.constant 5.000000e-01 : f32
    %22 = vector.broadcast %cst_12 : f32 to vector<8x16xf32>
    %23 = arith.mulf %22, %5 : vector<8x16xf32>
    %24 = arith.addf %1, %23 : vector<8x16xf32>
    %cst_13 = arith.constant 5.000000e-01 : f32
    %25 = vector.broadcast %cst_13 : f32 to vector<8x16xf32>
    %26 = arith.mulf %25, %7 : vector<8x16xf32>
    %27 = arith.addf %3, %26 : vector<8x16xf32>
    %28 = arith.subf %24, %18 : vector<8x16xf32>
    %29 = arith.subf %27, %21 : vector<8x16xf32>
    %30 = arith.mulf %28, %29 : vector<8x16xf32>
    %c0_14 = arith.constant 0 : index
    %c0_15 = arith.constant 0 : index
    %c0_16 = arith.constant 0 : index
    %31 = vector.load %arg3[%c0_14, %c0_15, %c0_16] : memref<5x8x16xf32, #tpu.memory_space<vmem>>, vector<1x8x16xf32>
    %32 = vector.shape_cast %31 : vector<1x8x16xf32> to vector<8x16xf32>
    %33 = vector.shape_cast %18 : vector<8x16xf32> to vector<1x8x16xf32>
    tpu.vector_store %arg3[%c0_14, %c0_15, %c0_16], %33 {strides = array<i32>} : memref<5x8x16xf32, #tpu.memory_space<vmem>>, vector<1x8x16xf32>,
    %c1_17 = arith.constant 1 : index
    %c0_18 = arith.constant 0 : index
    %c0_19 = arith.constant 0 : index
    %34 = vector.load %arg3[%c1_17, %c0_18, %c0_19] : memref<5x8x16xf32, #tpu.memory_space<vmem>>, vector<1x8x16xf32>
    %35 = vector.shape_cast %34 : vector<1x8x16xf32> to vector<8x16xf32>
    %36 = vector.shape_cast %21 : vector<8x16xf32> to vector<1x8x16xf32>
    tpu.vector_store %arg3[%c1_17, %c0_18, %c0_19], %36 {strides = array<i32>} : memref<5x8x16xf32, #tpu.memory_space<vmem>>, vector<1x8x16xf32>,
    %c2_20 = arith.constant 2 : index
    %c0_21 = arith.constant 0 : index
    %c0_22 = arith.constant 0 : index
    %37 = vector.load %arg3[%c2_20, %c0_21, %c0_22] : memref<5x8x16xf32, #tpu.memory_space<vmem>>, vector<1x8x16xf32>
    %38 = vector.shape_cast %37 : vector<1x8x16xf32> to vector<8x16xf32>
    %39 = vector.shape_cast %24 : vector<8x16xf32> to vector<1x8x16xf32>
    tpu.vector_store %arg3[%c2_20, %c0_21, %c0_22], %39 {strides = array<i32>} : memref<5x8x16xf32, #tpu.memory_space<vmem>>, vector<1x8x16xf32>,
    %c3_23 = arith.constant 3 : index
    %c0_24 = arith.constant 0 : index
    %c0_25 = arith.constant 0 : index
    %40 = vector.load %arg3[%c3_23, %c0_24, %c0_25] : memref<5x8x16xf32, #tpu.memory_space<vmem>>, vector<1x8x16xf32>
    %41 = vector.shape_cast %40 : vector<1x8x16xf32> to vector<8x16xf32>
    %42 = vector.shape_cast %27 : vector<8x16xf32> to vector<1x8x16xf32>
    tpu.vector_store %arg3[%c3_23, %c0_24, %c0_25], %42 {strides = array<i32>} : memref<5x8x16xf32, #tpu.memory_space<vmem>>, vector<1x8x16xf32>,
    %c4_26 = arith.constant 4 : index
    %c0_27 = arith.constant 0 : index
    %c0_28 = arith.constant 0 : index
    %43 = vector.load %arg3[%c4_26, %c0_27, %c0_28] : memref<5x8x16xf32, #tpu.memory_space<vmem>>, vector<1x8x16xf32>
    %44 = vector.shape_cast %43 : vector<1x8x16xf32> to vector<8x16xf32>
    %45 = vector.shape_cast %15 : vector<8x16xf32> to vector<1x8x16xf32>
    tpu.vector_store %arg3[%c4_26, %c0_27, %c0_28], %45 {strides = array<i32>} : memref<5x8x16xf32, #tpu.memory_space<vmem>>, vector<1x8x16xf32>,
    %c0_29 = arith.constant 0 : index
    %c0_30 = arith.constant 0 : index
    %46 = vector.load %arg6[%c0_29, %c0_30] : memref<8x16xf32, #tpu.memory_space<vmem>>, vector<8x16xf32>
    tpu.vector_store %arg6[%c0_29, %c0_30], %30 {strides = array<i32>} : memref<8x16xf32, #tpu.memory_space<vmem>>, vector<8x16xf32>,
    %47 = tpu.iota {dimensions = array<i32: 0>} : vector<8x16xi32>
    %c16_i32 = arith.constant 16 : i32
    %48 = vector.broadcast %c16_i32 : i32 to vector<8x16xi32>
    %49 = arith.muli %47, %48 : vector<8x16xi32>
    %50 = tpu.iota {dimensions = array<i32: 1>} : vector<8x16xi32>
    %51 = arith.addi %49, %50 : vector<8x16xi32>
    %c0_31 = arith.constant 0 : index
    %c0_32 = arith.constant 0 : index
    %52 = vector.load %arg7[%c0_31, %c0_32] : memref<8x16xi32, #tpu.memory_space<vmem>>, vector<8x16xi32>
    tpu.vector_store %arg7[%c0_31, %c0_32], %51 {strides = array<i32>} : memref<8x16xi32, #tpu.memory_space<vmem>>, vector<8x16xi32>,
    %cst_33 = arith.constant 2.500000e-01 : f32
    %53 = vector.broadcast %cst_33 : f32 to vector<8x16xf32>
    %54 = arith.cmpf oge, %15, %53 : vector<8x16xf32>
    %cst_34 = arith.constant -1.000000e+00 : f32
    %55 = vector.broadcast %cst_34 : f32 to vector<8x16xf32>
    %56 = arith.select %54, %15, %55 : vector<8x16xi1>, vector<8x16xf32>
    %c0_35 = arith.constant 0 : index
    %c0_36 = arith.constant 0 : index
    %57 = vector.load %arg5[%c0_35, %c0_36] : memref<8x16xf32, #tpu.memory_space<vmem>>, vector<8x16xf32>
    tpu.vector_store %arg5[%c0_35, %c0_36], %56 {strides = array<i32>} : memref<8x16xf32, #tpu.memory_space<vmem>>, vector<8x16xf32>,
    %58 = arith.extui %54 : vector<8x16xi1> to vector<8x16xi32>
    %59 = arith.sitofp %58 : vector<8x16xi32> to vector<8x16xf32>
    %60 = vector.shape_cast %59 : vector<8x16xf32> to vector<1x8x16xf32>
    %cst_37 = arith.constant dense<0.000000e+00> : vector<1xf32>
    %61 = vector.multi_reduction <add>, %60, %cst_37 [1, 2] : vector<1x8x16xf32> to vector<1xf32>
    %62 = vector.shape_cast %61 : vector<1xf32> to vector<1x1x1xf32>
    %63 = vector.extract %62[0, 0, 0] : f32 from vector<1x1x1xf32>
    %64 = arith.fptosi %63 : f32 to i32
    %c0_i32 = arith.constant 0 : i32
    %65 = arith.subi %64, %c0_i32 : i32
    %c1_i32 = arith.constant 1 : i32
    %c1_i32_38 = arith.constant 1 : i32
    %66 = arith.subi %c1_i32, %c1_i32_38 : i32
    %67 = arith.addi %65, %66 : i32
    %c1_i32_39 = arith.constant 1 : i32
    %68 = arith.divsi %67, %c1_i32_39 : i32
    %c1_i32_40 = arith.constant 1 : i32
    %c0_i32_41 = arith.constant 0 : i32
    %cst_42 = arith.constant 2.500000e-01 : f32
    %c0_i32_43 = arith.constant 0 : i32
    %69 = arith.subi %68, %c0_i32_43 : i32
    %70 = arith.addi %c0_i32_43, %69 : i32
    %c1_i32_44 = arith.constant 1 : i32
    scf.for %arg8 = %c0_i32_43 to %70 step %c1_i32_44  : i32 {
      %77 = arith.muli %arg8, %c1_i32_40 : i32
      %78 = arith.addi %c0_i32_41, %77 : i32
      %c0_50 = arith.constant 0 : index
      %c0_51 = arith.constant 0 : index
      %79 = vector.load %arg5[%c0_50, %c0_51] : memref<8x16xf32, #tpu.memory_space<vmem>>, vector<8x16xf32>
      %80 = vector.shape_cast %79 : vector<8x16xf32> to vector<1x8x16xf32>
      %cst_52 = arith.constant dense<0xFF800000> : vector<1xf32>
      %81 = vector.multi_reduction <maximumf>, %80, %cst_52 [1, 2] : vector<1x8x16xf32> to vector<1xf32>
      %82 = vector.shape_cast %81 : vector<1xf32> to vector<1x1x1xf32>
      %83 = vector.extract %82[0, 0, 0] : f32 from vector<1x1x1xf32>
      %84 = arith.cmpf oge, %83, %cst_42 : f32
      %85 = arith.extui %84 : i1 to i32
      %c0_i32_53 = arith.constant 0 : i32
      %86 = arith.cmpi ne, %85, %c0_i32_53 : i32
      scf.if %86 {
        %c0_54 = arith.constant 0 : index
        %c0_55 = arith.constant 0 : index
        %87 = vector.load %arg7[%c0_54, %c0_55] : memref<8x16xi32, #tpu.memory_space<vmem>>, vector<8x16xi32>
        %88 = vector.broadcast %83 : f32 to vector<8x16xf32>
        %89 = arith.cmpf oge, %79, %88 : vector<8x16xf32>
        %c128_i32 = arith.constant 128 : i32
        %90 = vector.broadcast %c128_i32 : i32 to vector<8x16xi32>
        %91 = arith.select %89, %87, %90 : vector<8x16xi1>, vector<8x16xi32>
        %92 = vector.shape_cast %91 : vector<8x16xi32> to vector<1x8x16xi32>
        %cst_56 = arith.constant dense<2147483647> : vector<1xi32>
        %93 = vector.multi_reduction <minsi>, %92, %cst_56 [1, 2] : vector<1x8x16xi32> to vector<1xi32>
        %94 = vector.shape_cast %93 : vector<1xi32> to vector<1x1x1xi32>
        %95 = vector.extract %94[0, 0, 0] : i32 from vector<1x1x1xi32>
        %96 = arith.index_cast %95 : i32 to index
        %c0_57 = arith.constant 0 : index
        %97 = vector.load %arg2[%96, %c0_57] : memref<128x128xf32, #tpu.memory_space<vmem>>, vector<1x128xf32>
        %98 = tpu.iota {dimensions = array<i32: 1>} : vector<1x128xi32>
        %c0_i32_58 = arith.constant 0 : i32
        %99 = vector.broadcast %c0_i32_58 : i32 to vector<1x128xi32>
        %100 = arith.cmpi eq, %98, %99 : vector<1x128xi32>
        %cst_59 = arith.constant 0.000000e+00 : f32
        %101 = vector.broadcast %cst_59 : f32 to vector<1x128xf32>
        %102 = arith.select %100, %97, %101 : vector<1x128xi1>, vector<1x128xf32>
        %103 = vector.shape_cast %102 : vector<1x128xf32> to vector<1x1x128xf32>
        %cst_60 = arith.constant dense<0.000000e+00> : vector<1xf32>
        %104 = vector.multi_reduction <add>, %103, %cst_60 [1, 2] : vector<1x1x128xf32> to vector<1xf32>
        %105 = vector.shape_cast %104 : vector<1xf32> to vector<1x1x1xf32>
        %106 = vector.extract %105[0, 0, 0] : f32 from vector<1x1x1xf32>
        %c1_i32_61 = arith.constant 1 : i32
        %107 = vector.broadcast %c1_i32_61 : i32 to vector<1x128xi32>
        %108 = arith.cmpi eq, %98, %107 : vector<1x128xi32>
        %cst_62 = arith.constant 0.000000e+00 : f32
        %109 = vector.broadcast %cst_62 : f32 to vector<1x128xf32>
        %110 = arith.select %108, %97, %109 : vector<1x128xi1>, vector<1x128xf32>
        %111 = vector.shape_cast %110 : vector<1x128xf32> to vector<1x1x128xf32>
        %cst_63 = arith.constant dense<0.000000e+00> : vector<1xf32>
        %112 = vector.multi_reduction <add>, %111, %cst_63 [1, 2] : vector<1x1x128xf32> to vector<1xf32>
        %113 = vector.shape_cast %112 : vector<1xf32> to vector<1x1x1xf32>
        %114 = vector.extract %113[0, 0, 0] : f32 from vector<1x1x1xf32>
        %c2_i32 = arith.constant 2 : i32
        %115 = vector.broadcast %c2_i32 : i32 to vector<1x128xi32>
        %116 = arith.cmpi eq, %98, %115 : vector<1x128xi32>
        %cst_64 = arith.constant 0.000000e+00 : f32
        %117 = vector.broadcast %cst_64 : f32 to vector<1x128xf32>
        %118 = arith.select %116, %97, %117 : vector<1x128xi1>, vector<1x128xf32>
        %119 = vector.shape_cast %118 : vector<1x128xf32> to vector<1x1x128xf32>
        %cst_65 = arith.constant dense<0.000000e+00> : vector<1xf32>
        %120 = vector.multi_reduction <add>, %119, %cst_65 [1, 2] : vector<1x1x128xf32> to vector<1xf32>
        %121 = vector.shape_cast %120 : vector<1xf32> to vector<1x1x1xf32>
        %122 = vector.extract %121[0, 0, 0] : f32 from vector<1x1x1xf32>
        %c3_i32 = arith.constant 3 : i32
        %123 = vector.broadcast %c3_i32 : i32 to vector<1x128xi32>
        %124 = arith.cmpi eq, %98, %123 : vector<1x128xi32>
        %cst_66 = arith.constant 0.000000e+00 : f32
        %125 = vector.broadcast %cst_66 : f32 to vector<1x128xf32>
        %126 = arith.select %124, %97, %125 : vector<1x128xi1>, vector<1x128xf32>
        %127 = vector.shape_cast %126 : vector<1x128xf32> to vector<1x1x128xf32>
        %cst_67 = arith.constant dense<0.000000e+00> : vector<1xf32>
        %128 = vector.multi_reduction <add>, %127, %cst_67 [1, 2] : vector<1x1x128xf32> to vector<1xf32>
        %129 = vector.shape_cast %128 : vector<1xf32> to vector<1x1x1xf32>
        %130 = vector.extract %129[0, 0, 0] : f32 from vector<1x1x1xf32>
        %cst_68 = arith.constant 5.000000e-01 : f32
        %131 = arith.mulf %cst_68, %122 : f32
        %132 = arith.subf %106, %131 : f32
        %cst_69 = arith.constant 5.000000e-01 : f32
        %133 = arith.mulf %cst_69, %130 : f32
        %134 = arith.subf %114, %133 : f32
        %cst_70 = arith.constant 5.000000e-01 : f32
        %135 = arith.mulf %cst_70, %122 : f32
        %136 = arith.addf %106, %135 : f32
        %cst_71 = arith.constant 5.000000e-01 : f32
        %137 = arith.mulf %cst_71, %130 : f32
        %138 = arith.addf %114, %137 : f32
        %139 = arith.subf %136, %132 : f32
        %140 = arith.subf %138, %134 : f32
        %141 = arith.mulf %139, %140 : f32
        %c0_72 = arith.constant 0 : index
        %c0_73 = arith.constant 0 : index
        %c0_74 = arith.constant 0 : index
        %142 = vector.load %arg3[%c0_72, %c0_73, %c0_74] : memref<5x8x16xf32, #tpu.memory_space<vmem>>, vector<1x8x16xf32>
        %143 = vector.shape_cast %142 : vector<1x8x16xf32> to vector<8x16xf32>
        %c1_75 = arith.constant 1 : index
        %c0_76 = arith.constant 0 : index
        %c0_77 = arith.constant 0 : index
        %144 = vector.load %arg3[%c1_75, %c0_76, %c0_77] : memref<5x8x16xf32, #tpu.memory_space<vmem>>, vector<1x8x16xf32>
        %145 = vector.shape_cast %144 : vector<1x8x16xf32> to vector<8x16xf32>
        %c2_78 = arith.constant 2 : index
        %c0_79 = arith.constant 0 : index
        %c0_80 = arith.constant 0 : index
        %146 = vector.load %arg3[%c2_78, %c0_79, %c0_80] : memref<5x8x16xf32, #tpu.memory_space<vmem>>, vector<1x8x16xf32>
        %147 = vector.shape_cast %146 : vector<1x8x16xf32> to vector<8x16xf32>
        %c3_81 = arith.constant 3 : index
        %c0_82 = arith.constant 0 : index
        %c0_83 = arith.constant 0 : index
        %148 = vector.load %arg3[%c3_81, %c0_82, %c0_83] : memref<5x8x16xf32, #tpu.memory_space<vmem>>, vector<1x8x16xf32>
        %149 = vector.shape_cast %148 : vector<1x8x16xf32> to vector<8x16xf32>
        %c0_84 = arith.constant 0 : index
        %c0_85 = arith.constant 0 : index
        %150 = vector.load %arg6[%c0_84, %c0_85] : memref<8x16xf32, #tpu.memory_space<vmem>>, vector<8x16xf32>
        %151 = vector.broadcast %136 : f32 to vector<8x16xf32>
        %152 = arith.minimumf %151, %147 : vector<8x16xf32>
        %153 = vector.broadcast %132 : f32 to vector<8x16xf32>
        %154 = arith.maximumf %153, %143 : vector<8x16xf32>
        %155 = arith.subf %152, %154 : vector<8x16xf32>
        %cst_86 = arith.constant 0.000000e+00 : f32
        %156 = vector.broadcast %cst_86 : f32 to vector<8x16xf32>
        %157 = arith.maximumf %155, %156 : vector<8x16xf32>
        %158 = vector.broadcast %138 : f32 to vector<8x16xf32>
        %159 = arith.minimumf %158, %149 : vector<8x16xf32>
        %160 = vector.broadcast %134 : f32 to vector<8x16xf32>
        %161 = arith.maximumf %160, %145 : vector<8x16xf32>
        %162 = arith.subf %159, %161 : vector<8x16xf32>
        %cst_87 = arith.constant 0.000000e+00 : f32
        %163 = vector.broadcast %cst_87 : f32 to vector<8x16xf32>
        %164 = arith.maximumf %162, %163 : vector<8x16xf32>
        %165 = arith.mulf %157, %164 : vector<8x16xf32>
        %166 = vector.broadcast %141 : f32 to vector<8x16xf32>
        %167 = arith.addf %166, %150 : vector<8x16xf32>
        %168 = arith.subf %167, %165 : vector<8x16xf32>
        %cst_88 = arith.constant 5.000000e-01 : f32
        %169 = vector.broadcast %cst_88 : f32 to vector<8x16xf32>
        %170 = arith.mulf %169, %168 : vector<8x16xf32>
        %171 = arith.cmpf ogt, %165, %170 : vector<8x16xf32>
        %172 = vector.broadcast %95 : i32 to vector<8x16xi32>
        %173 = arith.cmpi eq, %87, %172 : vector<8x16xi32>
        %cst_89 = arith.constant -1.000000e+00 : f32
        %174 = vector.broadcast %cst_89 : f32 to vector<8x16xf32>
        %175 = arith.select %171, %174, %79 : vector<8x16xi1>, vector<8x16xf32>
        %cst_90 = arith.constant -2.000000e+00 : f32
        %176 = vector.broadcast %cst_90 : f32 to vector<8x16xf32>
        %177 = arith.select %173, %176, %175 : vector<8x16xi1>, vector<8x16xf32>
        %c0_91 = arith.constant 0 : index
        %c0_92 = arith.constant 0 : index
        %178 = vector.load %arg5[%c0_91, %c0_92] : memref<8x16xf32, #tpu.memory_space<vmem>>, vector<8x16xf32>
        tpu.vector_store %arg5[%c0_91, %c0_92], %177 {strides = array<i32>} : memref<8x16xf32, #tpu.memory_space<vmem>>, vector<8x16xf32>,
      } else {
      }
    }
    %c0_45 = arith.constant 0 : index
    %c0_46 = arith.constant 0 : index
    %71 = vector.load %arg5[%c0_45, %c0_46] : memref<8x16xf32, #tpu.memory_space<vmem>>, vector<8x16xf32>
    %cst_47 = arith.constant -1.500000e+00 : f32
    %72 = vector.broadcast %cst_47 : f32 to vector<8x16xf32>
    %73 = arith.cmpf olt, %71, %72 : vector<8x16xf32>
    %74 = arith.extui %73 : vector<8x16xi1> to vector<8x16xi32>
    %75 = arith.sitofp %74 : vector<8x16xi32> to vector<8x16xf32>
    %c0_48 = arith.constant 0 : index
    %c0_49 = arith.constant 0 : index
    %76 = vector.load %arg4[%c0_48, %c0_49] : memref<8x16xf32, #tpu.memory_space<vmem>>, vector<8x16xf32>
    tpu.vector_store %arg4[%c0_48, %c0_49], %75 {strides = array<i32>} : memref<8x16xf32, #tpu.memory_space<vmem>>, vector<8x16xf32>,
    return
  }
  func.func @transform_0(%arg0: i32) -> (i32, i32, i32) {
    %c0_i32 = arith.constant 0 : i32
    %c0_i32_0 = arith.constant 0 : i32
    %c0_i32_1 = arith.constant 0 : i32
    %c0_i32_2 = arith.constant 0 : i32
    return %c0_i32, %c0_i32_0, %c0_i32_1 : i32, i32, i32
  }
  func.func @transform_1(%arg0: i32) -> (i32, i32) {
    %c0_i32 = arith.constant 0 : i32
    %c0_i32_0 = arith.constant 0 : i32
    %c0_i32_1 = arith.constant 0 : i32
    return %c0_i32, %c0_i32_0 : i32, i32
  }
  func.func @transform_2(%arg0: i32) -> (i32, i32, i32) {
    %c0_i32 = arith.constant 0 : i32
    %c0_i32_0 = arith.constant 0 : i32
    %c0_i32_1 = arith.constant 0 : i32
    %c0_i32_2 = arith.constant 0 : i32
    return %c0_i32, %c0_i32_0, %c0_i32_1 : i32, i32, i32
  }
  func.func @transform_3(%arg0: i32) -> (i32, i32) {
    %c0_i32 = arith.constant 0 : i32
    %c0_i32_0 = arith.constant 0 : i32
    %c0_i32_1 = arith.constant 0 : i32
    return %c0_i32, %c0_i32_0 : i32, i32
  }
}

</mosaic_0001>

<bundles_post_ra>
// kernel: tpu_custom_call.1
= control target key start
LH: loop header
LB: loop body
LE: loop exit
PB: predicated region body
PF: predicated region fallthrough
CT: control target
= control target key end

     0   :  { %9 = vsyncpa [#allocation6], 0  ;;  %s569_s0 = inlined_call_operand.hbm [shape: f32[5,8,16], index: 0, kind: input, shape index: {}]   ;;  %s570_s1 = inlined_call_operand.hbm [shape: f32[128,128], index: 1, kind: input, shape index: {}]   ;;  %s571_s2 = inlined_call_operand.hbm [shape: f32[5,8,16], index: 2, kind: output, shape index: {0}]   ;;  %s572_s3 = inlined_call_operand.hbm [shape: f32[8,16], index: 3, kind: output, shape index: {1}]  }
   0x1   :  { %10 = vsyncpa [#allocation9], 0 }
   0x2   :  { %11 = vsyncpa [#allocation7], 0 }
   0x3   :  { %12 = vsyncpa [#allocation12], 0  ;;  %s434_s12 = smov [#allocation5]   ;;  %s330_s16 = scalar_lea.hbm %s569_s0, 640 }
   0x4   :  { %s18_s13 = sshll.u32 %s434_s12, 4  ;;  %p331_p0 = scmp.ne.s32.totalorder %s569_s0, %s330_s16  ;;  %s19_s13 = int_to_ptr.vmem [resolvable:$true] %s18_s13 }
   0x5   :  { %p334_p1 = scmp.lt.u32.totalorder %s330_s16, %s569_s0 }
   0x7   :  { %p336_p2 = pnand %p334_p1, %p331_p0 }
   0x9   :  { %339 = shalt.err (!%p336_p2)
}
   0xa   :  { %s340_s21 = scalar_lea.vmem %s19_s13, 640  ;;  %p345_p4 = scmp.lt.s32.totalorder %s19_s13, %s19_s13 }
   0xb   :  { %p341_p3 = scmp.ne.s32.totalorder %s19_s13, %s340_s21  ;;  %p346_p5 = scmp.lt.s32.totalorder %s340_s21, %s340_s21 }
   0xd   :  { %p347_p6 = por %p346_p5, %p345_p4 }
   0xf   :  { %p348_p7 = pnand %p347_p6, %p341_p3 }
  0x11   :  { %351 = shalt.err (!%p348_p7)
}
  0x12   :  { %s435_s22 = smov 128   ;;  %s436_s23 = smov 8  }
  0x13   :  { %24 = dma.hbm_to_vmem [thread:$0]  %s569_s0, 640, %s19_s13, [#allocation6], %s435_s22, %s435_s22, %s436_s23  }
  0x14   :  { %s437_s26 = smov [#allocation8]   ;;  %s352_s30 = scalar_lea.hbm %s570_s1, 2048 }
  0x15   :  { %s30_s27 = sshll.u32 %s437_s26, 4  ;;  %p353_p8 = scmp.ne.s32.totalorder %s570_s1, %s352_s30  ;;  %s31_s27 = int_to_ptr.vmem [resolvable:$true] %s30_s27 }
  0x16   :  { %p356_p9 = scmp.lt.u32.totalorder %s352_s30, %s570_s1 }
  0x18   :  { %p358_p10 = pnand %p356_p9, %p353_p8 }
  0x1a   :  { %361 = shalt.err (!%p358_p10)
}
  0x1b   :  { %s362_s8 = scalar_lea.vmem %s31_s27, 2048  ;;  %p367_p12 = scmp.lt.s32.totalorder %s31_s27, %s31_s27 }
  0x1c   :  { %p363_p11 = scmp.ne.s32.totalorder %s31_s27, %s362_s8  ;;  %p368_p13 = scmp.lt.s32.totalorder %s362_s8, %s362_s8 }
  0x1e   :  { %p369_p0 = por %p368_p13, %p367_p12 }
  0x20   :  { %p370_p1 = pnand %p369_p0, %p363_p11 }
  0x22   :  { %373 = shalt.err (!%p370_p1)
}
  0x23   :  { %36 = dma.hbm_to_vmem [thread:$0]  %s570_s1, 2048, %s31_s27, [#allocation9], %s435_s22, %s435_s22, %s436_s23  }
  0x24   :  { %422 = dma.done.wait [#allocation6], 640  }
  0x25   :  { %423 = vsyncadd [#allocation6], 4294966656 }
  0x26   :  { %424 = dma.done.wait [#allocation9], 2048  }
  0x27   :  { %425 = vsyncadd [#allocation9], 4294965248  ;;  %v85_v0 = vlaneseq  ;;  %vm52_vm0 = vcmask 130048   ;;  %v51_v5 = vld [vmem:[#allocation5 + $0x20] sm:$0xff]  ;;  %v45_v8 = vld [vmem:[#allocation5 + $0x8] sm:$0xff]  ;;  %v438_v30 = vmov 0.0  }
  0x28   :  { %v43_v6 = vld [vmem:[#allocation5] sm:$0xff]  ;;  %v53_v7 = vsel %vm52_vm0, %v51_v5, -inf  ;;  %v47_v9 = vld [vmem:[#allocation5 + $0x10] sm:$0xff]  ;;  %v49_v10 = vld [vmem:[#allocation5 + $0x18] sm:$0xff] }
  0x29   :  { %v86_v1 = vshrl.u32 %v85_v0, 7  ;;  %v491_v2 = vand.u32 127, %v85_v0  ;;  %54 = vmax.xlane.f32.xlu0 %v53_v7  ;;  %v66_v11 = vmul.f32 0.5, %v47_v9  ;;  %v68_v12 = vmul.f32 0.5, %v49_v10 }
  0x2b   :  { %v87_v3 = vmul.u32 16, %v86_v1  ;;  %v67_v13 = vsub.f32 %v43_v6, %v66_v11  ;;  %v69_v14 = vsub.f32 %v45_v8, %v68_v12  ;;  %v70_v15 = vadd.f32 %v66_v11, %v43_v6 }
  0x2c   :  { %v71_v16 = vadd.f32 %v68_v12, %v45_v8 }
  0x2d   :  { %v90_v4 = vadd.s32 %v491_v2, %v87_v3  ;;  %v72_v17 = vsub.f32 %v70_v15, %v67_v13  ;;  %75 = vst.msk [vmem:[#allocation10] sm:$0xff] %vm52_vm0, %v67_v13  ;;  %77 = vst.msk [vmem:[#allocation10 + $0x8] sm:$0xff] %vm52_vm0, %v69_v14 }
  0x2e   :  { %v73_v18 = vsub.f32 %v71_v16, %v69_v14  ;;  %79 = vst.msk [vmem:[#allocation10 + $0x10] sm:$0xff] %vm52_vm0, %v70_v15  ;;  %81 = vst.msk [vmem:[#allocation10 + $0x18] sm:$0xff] %vm52_vm0, %v71_v16 }
  0x2f   :  { %91 = vst.msk [vmem:[#allocation4] sm:$0xff] %vm52_vm0, %v90_v4 }
  0x30   :  { %v74_v19 = vmul.f32 %v73_v18, %v72_v17 }
  0x32   :  { %84 = vst.msk [vmem:[#allocation3] sm:$0xff] %vm52_vm0, %v74_v19 }
  0xb6   :  { %v55_v20 = vpop.xlane.xlu0 %54 }
  0xb7   :  { %v56_v21 = vrot.slane %v55_v20, 4 }
  0xb9   :  { %v57_v22 = vmax.f32 %v55_v20, %v56_v21 }
  0xbb   :  { %v58_v23 = vrot.slane %v57_v22, 2 }
  0xbd   :  { %v59_v24 = vmax.f32 %v57_v22, %v58_v23 }
  0xbf   :  { %v60_v25 = vrot.slane %v59_v24, 1 }
  0xc1   :  { %v61_v26 = vmax.f32 %v59_v24, %v60_v25 }
  0xc3   :  { %292 = vpush %v61_v26 }
  0xf4   :  { %s293_s1 = spop %292 }
  0xf5   :  { %v63_v27 = vstv %s293_s1 }
  0xf6   :  { %328 = vrcp.f32 %v63_v27 }
 0x100   :  { %v329_v28 = vpop.eup %328 }
 0x101   :  { %v65_v29 = vmul.f32 %v329_v28, %v51_v5 }
 0x103   :  { %vm92_vm1 = vcmp.ge.f32.partialorder %v65_v29, 0.25  ;;  %83 = vst.msk [vmem:[#allocation10 + $0x20] sm:$0xff] %vm52_vm0, %v65_v29 }
 0x104   :  { %v289_v31 = vsel %vm92_vm1, 1.0, %v438_v30  ;;  %v93_v32 = vsel %vm92_vm1, %v65_v29, -1.0 }
 0x105   :  { %v97_v33 = vsel %vm52_vm0, %v289_v31, 0.0  ;;  %94 = vst.msk [vmem:[#allocation2] sm:$0xff] %vm52_vm0, %v93_v32 }
 0x106   :  { %98 = vadd.xlane.f32.xlu0 %v97_v33 }
 0x193   :  { %v99_v34 = vpop.xlane.xlu0 %98 }
 0x194   :  { %v100_v35 = vrot.slane %v99_v34, 4 }
 0x196   :  { %v101_v36 = vadd.f32 %v100_v35, %v99_v34 }
 0x198   :  { %v102_v37 = vrot.slane %v101_v36, 2 }
 0x19a   :  { %v103_v38 = vadd.f32 %v102_v37, %v101_v36 }
 0x19c   :  { %v104_v39 = vrot.slane %v103_v38, 1 }
 0x19e   :  { %v105_v40 = vadd.f32 %v104_v39, %v103_v38 }
 0x1a0   :  { %294 = vpush %v105_v40 }
 0x1d1   :  { %s295_s10 = spop %294 }
 0x1d2   :  { %p296_p2 = scmp.lt.s32.totalorder %s295_s10, 0  ;;  %s297_s11 = sceil.f32 %s295_s10 }
 0x1d3   :  { %s298_s12 = sfloor.f32 %s295_s10 }
 0x1d4   :  { %s574_s11 = smov (!%p296_p2, %s297_s11), %s298_s12 }
 0x1d5   :  { %s300_s13 = scvt.f32.s32 %s574_s11 }
 0x1d7   :  { %p290_p3 = scmp.le.s32.totalorder %s300_s13, 0 }
 0x1d8   :  { %s510_s14 = smov (!%p290_p3), 0  }
 0x1d9   :  { %286 = sbr.rel (%p290_p3) target bundleno = 1296 (0x510), region = 58 }
 0x1e0 LB: > { %v515_v41 = vld [vmem:[#allocation2] sm:$0xff]  ;;  %s432_s14 = sphi %s510_s14, %s111_s14  }
 0x1e1   : > { %v115_v42 = vsel %vm52_vm0, %v515_v41, -inf }
 0x1e2   : > { %116 = vmax.xlane.f32.xlu0 %v115_v42 }
 0x26f   : > { %v117_v43 = vpop.xlane.xlu0 %116 }
 0x270   : > { %v118_v44 = vrot.slane %v117_v43, 4 }
 0x272   : > { %v119_v45 = vmax.f32 %v117_v43, %v118_v44 }
 0x274   : > { %v120_v46 = vrot.slane %v119_v45, 2 }
 0x276   : > { %v121_v47 = vmax.f32 %v119_v45, %v120_v46 }
 0x278   : > { %v122_v48 = vrot.slane %v121_v47, 1 }
 0x27a   : > { %v123_v49 = vmax.f32 %v121_v47, %v122_v48 }
 0x27c   : > { %301 = vpush %v123_v49 }
 0x2ad   : > { %s302_s15 = spop %301 }
 0x2ae   : > { %p125_p4 = scmp.ge.f32.partialorder %s302_s15, 0.25 }
 0x2af   : > { %v519_v50 = vld [vmem:[#allocation4] sm:$0xff] (%p125_p4)  ;;  %v130_v51 = vstv (%p125_p4), %s302_s15  ;;  %vm185_vm7 = vcmp.eq.s32.totalorder (%p125_p4), %v491_v2, 2  ;;  %vm160_vm8 = vcmp.eq.s32.totalorder (%p125_p4), %v491_v2, 0  ;;  %vm162_vm9 = vcmask (%p125_p4), 1040384   ;;  %v218_v47 = vld [vmem:[#allocation10] sm:$0xff] (%p125_p4) }
 0x2b0   : > { %128 = sbr.rel (!%p125_p4) target bundleno = 1285 (0x505), region = 28  ;;  %vm131_vm2 = vcmp.ge.f32.partialorder (%p125_p4), %v515_v41, %v130_v51  ;;  %vm173_vm10 = vcmp.eq.s32.totalorder (%p125_p4), %v491_v2, 1  ;;  %vm197_vm11 = vcmp.eq.s32.totalorder (%p125_p4), %v491_v2, 3  ;;  %v220_v48 = vld [vmem:[#allocation10 + $0x10] sm:$0xff] (%p125_p4) }
 0x2b1   : > { %v132_v52 = vsel (%p125_p4), %vm131_vm2, %v519_v50, 128 }
 0x2b2   : > { %v133_v53 = vsel (%p125_p4), %vm52_vm0, %v132_v52, 2147483647 }
 0x2b3   : > { %v135_v54 = vshra.s32 (%p125_p4), %v133_v53, 16  ;;  %v134_v56 = vand.u32 (%p125_p4), 65535, %v133_v53 }
 0x2b5   : > { %v137_v55 = vcvt.s32.f32 (%p125_p4), %v135_v54  ;;  %v136_v57 = vcvt.s32.f32 (%p125_p4), %v134_v56  ;;  %v219_v54 = vld [vmem:[#allocation10 + $0x8] sm:$0xff] (%p125_p4) }
 0x2b7   : > { %138 = vmin.xlane.f32.xlu0 %v137_v55 }
 0x344   : > { %v139_v58 = vpop.xlane.xlu0 %138 }
 0x345   : > { %vm140_vm3 = vcmp.eq.f32.partialorder %v137_v55, %v139_v58  ;;  %v145_v60 = vcvt.f32.s32 %v139_v58  ;;  %v221_v55 = vld [vmem:[#allocation10 + $0x18] sm:$0xff] }
 0x346   : > { %v141_v59 = vsel %vm140_vm3, %v136_v57, inf }
 0x347   : > { %142 = vmin.xlane.f32.xlu0 %v141_v59  ;;  %v146_v62 = vshll.u32 %v145_v60, 16 }
 0x3d4   : > { %v143_v61 = vpop.xlane.xlu0 %142 }
 0x3d5   : > { %v144_v63 = vcvt.f32.s32 %v143_v61 }
 0x3d7   : > { %v147_v0 = vadd.s32 %v146_v62, %v144_v63  ;;  %v222_v62 = vld [vmem:[#allocation3] sm:$0xff] }
 0x3d9   : > { %v148_v1 = vrot.slane %v147_v0, 4 }
 0x3db   : > { %vm149_vm4 = vcmp.lt.s32.totalorder %v147_v0, %v148_v1 }
 0x3dc   : > { %v150_v3 = vsel %vm149_vm4, %v147_v0, %v148_v1 }
 0x3dd   : > { %v151_v4 = vrot.slane %v150_v3, 2 }
 0x3df   : > { %vm152_vm5 = vcmp.lt.s32.totalorder %v150_v3, %v151_v4 }
 0x3e0   : > { %v153_v5 = vsel %vm152_vm5, %v150_v3, %v151_v4 }
 0x3e1   : > { %v154_v6 = vrot.slane %v153_v5, 1 }
 0x3e3   : > { %vm155_vm6 = vcmp.lt.s32.totalorder %v153_v5, %v154_v6 }
 0x3e4   : > { %v156_v7 = vsel %vm155_vm6, %v153_v5, %v154_v6 }
 0x3e5   : > { %303 = vpush %v156_v7 }
 0x416   : > { %s524_s16 = spop %303 }
 0x417   : > { %s158_s17 = scalar_lea.vmem [#allocation8], %s524_s16  ;;  %v241_v6 = vstv %s524_s16 }
 0x418   : > { %v159_v8 = vld [vmem:[%s158_s17] sm:$0x1]  ;;  %vm242_vm13 = vcmp.eq.s32.totalorder %v519_v50, %v241_v6 }
 0x419   : > { %v186_v9 = vsel %vm185_vm7, %v159_v8, 0.0  ;;  %v161_v10 = vsel %vm160_vm8, %v159_v8, 0.0  ;;  %v174_v13 = vsel %vm173_vm10, %v159_v8, 0.0  ;;  %v198_v15 = vsel %vm197_vm11, %v159_v8, 0.0 }
 0x41a   : > { %v187_v11 = vsel %vm162_vm9, %v186_v9, 0.0  ;;  %v163_v12 = vsel %vm162_vm9, %v161_v10, 0.0  ;;  %v175_v14 = vsel %vm162_vm9, %v174_v13, 0.0  ;;  %v199_v16 = vsel %vm162_vm9, %v198_v15, 0.0 }
 0x41b   : > { %188 = vadd.xlane.f32.xlu0 %v187_v11  ;;  %164 = vadd.xlane.f32.xlu1 %v163_v12 }
 0x41f   : > { %176 = vadd.xlane.f32.xlu1 %v175_v14 }
 0x423   : > { %200 = vadd.xlane.f32.xlu1 %v199_v16 }
 0x4a8   : > { %v189_v17 = vpop.xlane.xlu0 %188  ;;  %v165_v18 = vpop.xlane.xlu1 %164 }
 0x4a9   : > { %v190_v19 = vrot.slane %v189_v17, 4  ;;  %v166_v20 = vrot.slane %v165_v18, 4 }
 0x4ab   : > { %v191_v21 = vadd.f32 %v190_v19, %v189_v17  ;;  %v167_v22 = vadd.f32 %v166_v20, %v165_v18 }
 0x4ac   : > { %v177_v23 = vpop.xlane.xlu1 %176 }
 0x4ad   : > { %v192_v24 = vrot.slane %v191_v21, 2  ;;  %v168_v25 = vrot.slane %v167_v22, 2  ;;  %v178_v26 = vrot.slane %v177_v23, 4 }
 0x4af   : > { %v179_v27 = vadd.f32 %v178_v26, %v177_v23  ;;  %v169_v28 = vadd.f32 %v168_v25, %v167_v22  ;;  %v193_v29 = vadd.f32 %v192_v24, %v191_v21 }
 0x4b0   : > { %v201_v31 = vpop.xlane.xlu1 %200 }
 0x4b1   : > { %v180_v32 = vrot.slane %v179_v27, 2  ;;  %v202_v33 = vrot.slane %v201_v31, 4  ;;  %v170_v34 = vrot.slane %v169_v28, 1  ;;  %v194_v38 = vrot.slane %v193_v29, 1 }
 0x4b3   : > { %v203_v35 = vadd.f32 %v202_v33, %v201_v31  ;;  %v171_v36 = vadd.f32 %v170_v34, %v169_v28  ;;  %v181_v37 = vadd.f32 %v180_v32, %v179_v27  ;;  %v195_v44 = vadd.f32 %v194_v38, %v193_v29 }
 0x4b5   : > { %v204_v39 = vrot.slane %v203_v35, 2  ;;  %305 = vpush %v171_v36  ;;  %v182_v40 = vrot.slane %v181_v37, 1 }
 0x4b7   : > { %v205_v42 = vadd.f32 %v204_v39, %v203_v35  ;;  %v183_v43 = vadd.f32 %v182_v40, %v181_v37 }
 0x4b9   : > { %307 = vpush %v183_v43  ;;  %v206_v45 = vrot.slane %v205_v42, 1 }
 0x4ba   : > { %309 = vpush %v195_v44 }
 0x4bb   : > { %v207_v46 = vadd.f32 %v206_v45, %v205_v42 }
 0x4bd   : > { %311 = vpush %v207_v46 }
 0x4e6   : > { %s306_s18 = spop %305 }
 0x4ea   : > { %s308_s19 = spop %307 }
 0x4eb   : > { %s310_s20 = spop %309 }
 0x4ec   : > { %s209_s21 = smul.f32 0.5, %s310_s20 }
 0x4ee   : > { %s210_s24 = ssub.f32 %s306_s18, %s209_s21  ;;  %s312_s25 = spop %311 }
 0x4ef   : > { %s213_s26 = sadd.f32 %s306_s18, %s209_s21  ;;  %s211_s27 = smul.f32 0.5, %s312_s25 }
 0x4f0   : > { %v225_v49 = vstv %s210_s24 }
 0x4f1   : > { %v223_v51 = vstv %s213_s26  ;;  %v226_v53 = vmax.f32 %v225_v49, %v218_v47  ;;  %s212_s28 = ssub.f32 %s308_s19, %s211_s27 }
 0x4f2   : > { %v224_v52 = vmin.f32 %v223_v51, %v220_v48  ;;  %s214_s29 = sadd.f32 %s308_s19, %s211_s27 }
 0x4f3   : > { %s215_s30 = ssub.f32 %s213_s26, %s210_s24  ;;  %v231_v56 = vstv %s212_s28 }
 0x4f4   : > { %s216_s4 = ssub.f32 %s214_s29, %s212_s28  ;;  %v229_v57 = vstv %s214_s29  ;;  %v232_v58 = vmax.f32 %v231_v56, %v219_v54  ;;  %v227_v59 = vsub.f32 %v224_v52, %v226_v53 }
 0x4f5   : > { %v230_v60 = vmin.f32 %v229_v57, %v221_v55 }
 0x4f6   : > { %s217_s5 = smul.f32 %s216_s4, %s215_s30  ;;  %v228_v0 = vmax.f32 %v227_v59, 0.0 }
 0x4f7   : > { %v233_v61 = vsub.f32 %v230_v60, %v232_v58 }
 0x4f8   : > { %v236_v63 = vstv %s217_s5 }
 0x4f9   : > { %v234_v1 = vmax.f32 %v233_v61, 0.0  ;;  %v237_v4 = vadd.f32 %v236_v63, %v222_v62 }
 0x4fb   : > { %v235_v3 = vmul.f32 %v234_v1, %v228_v0 }
 0x4fd   : > { %v238_v5 = vsub.f32 %v237_v4, %v235_v3 }
 0x4ff   : > { %v239_v7 = vmul.f32 0.5, %v238_v5 }
 0x501   : > { %vm240_vm12 = vcmp.gt.f32.partialorder %v235_v3, %v239_v7 }
 0x502   : > { %v243_v8 = vsel %vm240_vm12, -1.0, %v515_v41 }
 0x503   : > { %v244_v9 = vsel %vm242_vm13, -2.0, %v243_v8 }
 0x504   : > { %245 = vst.msk [vmem:[#allocation2] sm:$0xff] %vm52_vm0, %v244_v9 }
 0x505 PF: > { %s111_s14 = sadd.s32 1, %s432_s14  }
 0x506   : > { %p110_p5 = scmp.ge.s32.totalorder %s111_s14, %s300_s13 }
 0x509   :  { %113 = sbr.rel (!%p110_p5) target bundleno = 480 (0x1e0), region = 64 }
 0x510 PF:  { %v246_v10 = vld [vmem:[#allocation2] sm:$0xff]  ;;  %s439_s6 = smov [#allocation10]   ;;  %s440_s8 = smov [#allocation11]  }
 0x511   :  { %vm247_vm14 = vcmp.lt.f32.partialorder %v246_v10, -1.5  ;;  %s256_s7 = sshll.u32 %s439_s6, 4  ;;  %s269_s0 = sshll.u32 %s440_s8, 4  ;;  %s257_s7 = int_to_ptr.vmem [resolvable:$true] %s256_s7  ;;  %s270_s0 = int_to_ptr.vmem [resolvable:$true] %s269_s0 }
 0x512   :  { %v291_v41 = vsel %vm247_vm14, 1.0, %v438_v30  ;;  %s374_s9 = scalar_lea.vmem %s257_s7, 640  ;;  %p379_p7 = scmp.lt.s32.totalorder %s257_s7, %s257_s7 }
 0x513   :  { %250 = vst.msk [vmem:[#allocation11] sm:$0xff] %vm52_vm0, %v291_v41  ;;  %p375_p6 = scmp.ne.s32.totalorder %s257_s7, %s374_s9  ;;  %p380_p8 = scmp.lt.s32.totalorder %s374_s9, %s374_s9 }
 0x515   :  { %p381_p9 = por %p380_p8, %p379_p7 }
 0x517   :  { %p382_p10 = pnand %p381_p9, %p375_p6 }
 0x519   :  { %385 = shalt.err (!%p382_p10)
}
 0x51a   :  { %s386_s11 = scalar_lea.hbm %s571_s2, 640 }
 0x51b   :  { %p387_p11 = scmp.ne.s32.totalorder %s571_s2, %s386_s11  ;;  %p390_p12 = scmp.lt.u32.totalorder %s386_s11, %s571_s2 }
 0x51d   :  { %p392_p13 = pnand %p390_p12, %p387_p11 }
 0x51f   :  { %395 = shalt.err (!%p392_p13)
}
 0x520   :  { %262 = dma.vmem_to_hbm [thread:$0]  %s257_s7, 640, %s571_s2, [#allocation7], %s435_s22, %s435_s22, %s436_s23  }
 0x521   :  { %s396_s18 = scalar_lea.vmem %s270_s0, 128  ;;  %p401_p1 = scmp.lt.s32.totalorder %s270_s0, %s270_s0 }
 0x522   :  { %p397_p0 = scmp.ne.s32.totalorder %s270_s0, %s396_s18  ;;  %p402_p2 = scmp.lt.s32.totalorder %s396_s18, %s396_s18 }
 0x524   :  { %p403_p3 = por %p402_p2, %p401_p1 }
 0x526   :  { %p404_p4 = pnand %p403_p3, %p397_p0 }
 0x528   :  { %407 = shalt.err (!%p404_p4)
}
 0x529   :  { %s408_s21 = scalar_lea.hbm %s572_s3, 128 }
 0x52a   :  { %p409_p5 = scmp.ne.s32.totalorder %s572_s3, %s408_s21  ;;  %p412_p6 = scmp.lt.u32.totalorder %s408_s21, %s572_s3 }
 0x52c   :  { %p414_p7 = pnand %p412_p6, %p409_p5 }
 0x52e   :  { %417 = shalt.err (!%p414_p7)
}
 0x52f   :  { %272 = dma.vmem_to_hbm [thread:$0]  %s270_s0, 128, %s572_s3, [#allocation12]  }
 0x530   :  { %426 = dma.done.wait [#allocation7], 640  }
 0x531   :  { %427 = vsyncadd [#allocation7], 4294966656 }
 0x532   :  { %428 = dma.done.wait [#allocation12], 128  }
 0x533   :  { %429 = vsyncadd [#allocation12], 4294967168 }
 0x534   :  { %279 = vsyncpa [#allocation6], 1 }
 0x535   :  { %280 = vsyncpa [#allocation9], 1 }
 0x536   :  { %281 = vsyncpa [#allocation7], 1 }
 0x537   :  { %282 = vsyncpa [#allocation12], 1 }

</bundles_post_ra>
